<compile_context>
chip_gen: v7x
topology: tpu7x:2x2x1
jax: 0.10.0
libtpu: 0.0.40
codegen_flags: <defaults>
</compile_context>

<pallas_src>
import jax
import jax.numpy as jnp
from jax.experimental import pallas as pl
from jax.experimental.pallas import tpu as pltpu

BN_EPS = 1e-5


# --------------------------------------------------------------------------- #
# Kernel
# --------------------------------------------------------------------------- #
def lift_kernel(x_ref, w1_ref, wa_ref, wb_ref, wo_ref, bias_ref, out_ref):
    """One batch tile of the LiftModel forward (BN already folded into W/b)."""
    x = x_ref[...]
    out_pad = out_ref.shape[-1]

    b1 = bias_ref[0:1, :]          # hidden1 bias            (1, H)
    ba = bias_ref[1:2, :]          # res-block linear-1 bias (1, H), BN folded
    bb = bias_ref[2:3, :]          # res-block linear-2 bias (1, H), BN folded
    bo = bias_ref[3:4, :out_pad]   # output bias (padded to lane-dense width)

    hid = jnp.dot(x, w1_ref[...], preferred_element_type=jnp.float32) + b1

    def res_block(h):
        # Linear(+folded BN) -> ReLU -> (Dropout=id) -> Linear(+folded BN) -> ReLU
        y = jnp.dot(h, wa_ref[...], preferred_element_type=jnp.float32) + ba
        y = jnp.maximum(y, 0.0)
        y = jnp.dot(y, wb_ref[...], preferred_element_type=jnp.float32) + bb
        y = jnp.maximum(y, 0.0)
        return y

    # Both residual blocks share the same parameters (as in the PyTorch model).
    x_res = res_block(hid) + hid
    final = x_res + res_block(x_res)

    out_ref[...] = (
        jnp.dot(final, wo_ref[...], preferred_element_type=jnp.float32) + bo
    ).astype(out_ref.dtype)


# --------------------------------------------------------------------------- #
# Parameter preparation (done once, at load time)
# --------------------------------------------------------------------------- #
def prepare_fused_params(p):
    """Fold eval-mode BatchNorm into the adjacent Linears; pack biases."""
    H = p["w1"].shape[1]
    out_dim = p["wo"].shape[1]
    out_pad = ((out_dim + 127) // 128) * 128
    assert out_pad <= H, "bias packing assumes padded out_dim <= hidden"

    s1 = p["g1"] * jax.lax.rsqrt(p["v1"] + BN_EPS)   # (1, H)
    s2 = p["g2"] * jax.lax.rsqrt(p["v2"] + BN_EPS)   # (1, H)

    wa_f = p["wa"] * s1                               # scale output features
    ba_f = (p["ba"] - p["m1"]) * s1 + p["be1"]
    wb_f = p["wb"] * s2
    bb_f = (p["bb"] - p["m2"]) * s2 + p["be2"]

    # Lane-dense output Linear (pad 45 -> 128 columns; sliced after the call).
    wo_p = jnp.zeros((H, out_pad), jnp.float32).at[:, :out_dim].set(p["wo"])
    bo_p = jnp.zeros((1, H), jnp.float32).at[:, :out_dim].set(p["bo"])

    bias_pack = jnp.concatenate([p["b1"], ba_f, bb_f, bo_p], axis=0)  # (4, H)

    return {
        "w1": p["w1"], "wa": wa_f, "wb": wb_f, "wo": wo_p,
        "bias": bias_pack, "out_dim": out_dim, "out_pad": out_pad,
    }


# --------------------------------------------------------------------------- #
# Wrapper
# --------------------------------------------------------------------------- #
def lift_model_forward(x, fused, *, tile_b=None):
    """x: (B, 30) float32. fused: output of prepare_fused_params."""
    B, in_dim = x.shape
    out_dim, out_pad = fused["out_dim"], fused["out_pad"]

    if tile_b is None:
        # Small batches: one tile. Large batches: 256-row tiles; the parallel
        # grid axis lets megacore (v7x: 2 TCs) shard the work.
        tile_b = min(max(8, ((B + 7) // 8) * 8), 256)
    b_pad = ((B + tile_b - 1) // tile_b) * tile_b
    if b_pad != B:
        x = jnp.pad(x, ((0, b_pad - B), (0, 0)))

    def full_spec(arr):
        # Weights stay VMEM-resident across grid steps (same block every step).
        return pl.BlockSpec(arr.shape, lambda i: (0, 0))

    out = pl.pallas_call(
        lift_kernel,
        out_shape=jax.ShapeDtypeStruct((b_pad, out_pad), jnp.float32),
        grid=(b_pad // tile_b,),
        in_specs=[
            pl.BlockSpec((tile_b, in_dim), lambda i: (i, 0)),
            full_spec(fused["w1"]),
            full_spec(fused["wa"]),
            full_spec(fused["wb"]),
            full_spec(fused["wo"]),
            full_spec(fused["bias"]),
        ],
        out_specs=pl.BlockSpec((tile_b, out_pad), lambda i: (i, 0)),
        compiler_params=pltpu.CompilerParams(
            dimension_semantics=("parallel",)),
    )(x, fused["w1"], fused["wa"], fused["wb"], fused["wo"], fused["bias"])

    return out[:B, :out_dim]


# --------------------------------------------------------------------------- #
# Synthetic parameters + pure-JAX reference (unfused BN) for correctness check
# --------------------------------------------------------------------------- #
def init_params(key, in_dim=30, hidden=128, out_dim=45):
    ks = jax.random.split(key, 12)

    def w(k, shape, scale):
        return jax.random.normal(k, shape, jnp.float32) * scale

    return {
        "w1": w(ks[0], (in_dim, hidden), 0.1),
        "b1": w(ks[1], (1, hidden), 0.05),
        "wa": w(ks[2], (hidden, hidden), 0.05),
        "ba": w(ks[3], (1, hidden), 0.05),
        "g1": 1.0 + 0.1 * jax.random.normal(ks[4], (1, hidden), jnp.float32),
        "be1": w(ks[5], (1, hidden), 0.05),
        "m1": w(ks[6], (1, hidden), 0.05),
        "v1": 1.0 + 0.1 * jnp.abs(jax.random.normal(ks[7], (1, hidden), jnp.float32)),
        "wb": w(ks[8], (hidden, hidden), 0.05),
        "bb": w(ks[9], (1, hidden), 0.05),
        "g2": 1.0 + 0.1 * jax.random.normal(ks[10], (1, hidden), jnp.float32),
        "be2": w(ks[11], (1, hidden), 0.05),
        "m2": jnp.zeros((1, hidden), jnp.float32),
        "v2": jnp.ones((1, hidden), jnp.float32),
        "wo": w(jax.random.fold_in(key, 99), (hidden, out_dim), 0.1),
        "bo": w(jax.random.fold_in(key, 100), (1, out_dim), 0.05),
    }


def reference_forward(x, p):
    def bn(y, g, b, m, v):
        return (y - m) * jax.lax.rsqrt(v + BN_EPS) * g + b

    def block(h):
        y = jnp.maximum(bn(h @ p["wa"] + p["ba"], p["g1"], p["be1"], p["m1"], p["v1"]), 0.0)
        y = jnp.maximum(bn(y @ p["wb"] + p["bb"], p["g2"], p["be2"], p["m2"], p["v2"]), 0.0)
        return y

    hid = x @ p["w1"] + p["b1"]
    xr = block(hid) + hid
    final = xr + block(xr)
    return final @ p["wo"] + p["bo"]


if __name__ == "__main__":
    key = jax.random.PRNGKey(0)
    k_x, k_p = jax.random.split(key)

    B, IN_DIM, HIDDEN, OUT_DIM = 8, 15 * 2, 128, 15 * 3
    params = init_params(k_p, IN_DIM, HIDDEN, OUT_DIM)
    fused = prepare_fused_params(params)

    # Small-batch path (single grid step).
    x = jax.random.normal(k_x, (B, IN_DIM), jnp.float32)
    out = jax.block_until_ready(lift_model_forward(x, fused))
    ref = reference_forward(x, params)
    assert out.shape == (B, OUT_DIM), out.shape
    assert jnp.allclose(out, ref, atol=1e-4, rtol=1e-4), float(jnp.max(jnp.abs(out - ref)))

    # Multi-tile batch-grid path (exercises padding + parallel grid axis).
    x2 = jax.random.normal(jax.random.fold_in(k_x, 1), (50, IN_DIM), jnp.float32)
    out2 = jax.block_until_ready(lift_model_forward(x2, fused, tile_b=16))
    ref2 = reference_forward(x2, params)
    assert out2.shape == (50, OUT_DIM), out2.shape
    assert jnp.allclose(out2, ref2, atol=1e-4, rtol=1e-4), float(jnp.max(jnp.abs(out2 - ref2)))

    print("KERNEL_OK")
</pallas_src>

<mosaic_0001>
module attributes {stable_mosaic.version = 11 : i64} {
  func.func @lift_kernel(%arg0: i32, %arg1: memref<8x30xf32, #tpu.memory_space<vmem>>, %arg2: memref<30x128xf32, #tpu.memory_space<vmem>>, %arg3: memref<128x128xf32, #tpu.memory_space<vmem>>, %arg4: memref<128x128xf32, #tpu.memory_space<vmem>>, %arg5: memref<128x128xf32, #tpu.memory_space<vmem>>, %arg6: memref<4x128xf32, #tpu.memory_space<vmem>>, %arg7: memref<8x128xf32, #tpu.memory_space<vmem>>) attributes {dimension_semantics = [#tpu.dimension_semantics<parallel>], iteration_bounds = array<i64: 1>, scalar_prefetch = 0 : i64, scratch_operands = 0 : i64, tpu.core_type = #tpu.core_type<tc>, window_params = [{transform_indices = @transform_0, window_bounds = array<i64: 8, 30>}, {pipeline_mode = #tpu.pipeline_mode<synchronous>, transform_indices = @transform_1, window_bounds = array<i64: 30, 128>}, {pipeline_mode = #tpu.pipeline_mode<synchronous>, transform_indices = @transform_2, window_bounds = array<i64: 128, 128>}, {pipeline_mode = #tpu.pipeline_mode<synchronous>, transform_indices = @transform_3, window_bounds = array<i64: 128, 128>}, {pipeline_mode = #tpu.pipeline_mode<synchronous>, transform_indices = @transform_4, window_bounds = array<i64: 128, 128>}, {pipeline_mode = #tpu.pipeline_mode<synchronous>, transform_indices = @transform_5, window_bounds = array<i64: 4, 128>}, {transform_indices = @transform_6, window_bounds = array<i64: 8, 128>}]} {
    %c0 = arith.constant 0 : index
    %c0_0 = arith.constant 0 : index
    %0 = vector.load %arg1[%c0, %c0_0] : memref<8x30xf32, #tpu.memory_space<vmem>>, vector<8x30xf32>
    %c0_1 = arith.constant 0 : index
    %c0_2 = arith.constant 0 : index
    %1 = vector.load %arg6[%c0_1, %c0_2] : memref<4x128xf32, #tpu.memory_space<vmem>>, vector<1x128xf32>
    %c1 = arith.constant 1 : index
    %c0_3 = arith.constant 0 : index
    %2 = vector.load %arg6[%c1, %c0_3] : memref<4x128xf32, #tpu.memory_space<vmem>>, vector<1x128xf32>
    %c2 = arith.constant 2 : index
    %c0_4 = arith.constant 0 : index
    %3 = vector.load %arg6[%c2, %c0_4] : memref<4x128xf32, #tpu.memory_space<vmem>>, vector<1x128xf32>
    %c3 = arith.constant 3 : index
    %c0_5 = arith.constant 0 : index
    %4 = vector.load %arg6[%c3, %c0_5] : memref<4x128xf32, #tpu.memory_space<vmem>>, vector<1x128xf32>
    %c0_6 = arith.constant 0 : index
    %c0_7 = arith.constant 0 : index
    %5 = vector.load %arg2[%c0_6, %c0_7] : memref<30x128xf32, #tpu.memory_space<vmem>>, vector<30x128xf32>
    %cst = arith.constant dense<0.000000e+00> : vector<8x128xf32>
    %6 = tpu.matmul %0, %5, %cst {dimension_numbers = #tpu.dot_dimension_numbers<[1], [0], [0], [1], [0, 0, 1, 1], [], []>} : vector<8x30xf32>, vector<30x128xf32>, vector<8x128xf32> -> vector<8x128xf32>
    %7 = vector.broadcast %1 : vector<1x128xf32> to vector<8x128xf32>
    %8 = arith.addf %6, %7 : vector<8x128xf32>
    %c0_8 = arith.constant 0 : index
    %c0_9 = arith.constant 0 : index
    %9 = vector.load %arg3[%c0_8, %c0_9] : memref<128x128xf32, #tpu.memory_space<vmem>>, vector<128x128xf32>
    %cst_10 = arith.constant dense<0.000000e+00> : vector<8x128xf32>
    %10 = tpu.matmul %8, %9, %cst_10 {dimension_numbers = #tpu.dot_dimension_numbers<[1], [0], [0], [1], [0, 0, 1, 1], [], []>} : vector<8x128xf32>, vector<128x128xf32>, vector<8x128xf32> -> vector<8x128xf32>
    %11 = vector.broadcast %2 : vector<1x128xf32> to vector<8x128xf32>
    %12 = arith.addf %10, %11 : vector<8x128xf32>
    %cst_11 = arith.constant 0.000000e+00 : f32
    %13 = vector.broadcast %cst_11 : f32 to vector<8x128xf32>
    %14 = arith.maximumf %12, %13 : vector<8x128xf32>
    %c0_12 = arith.constant 0 : index
    %c0_13 = arith.constant 0 : index
    %15 = vector.load %arg4[%c0_12, %c0_13] : memref<128x128xf32, #tpu.memory_space<vmem>>, vector<128x128xf32>
    %cst_14 = arith.constant dense<0.000000e+00> : vector<8x128xf32>
    %16 = tpu.matmul %14, %15, %cst_14 {dimension_numbers = #tpu.dot_dimension_numbers<[1], [0], [0], [1], [0, 0, 1, 1], [], []>} : vector<8x128xf32>, vector<128x128xf32>, vector<8x128xf32> -> vector<8x128xf32>
    %17 = vector.broadcast %3 : vector<1x128xf32> to vector<8x128xf32>
    %18 = arith.addf %16, %17 : vector<8x128xf32>
    %cst_15 = arith.constant 0.000000e+00 : f32
    %19 = vector.broadcast %cst_15 : f32 to vector<8x128xf32>
    %20 = arith.maximumf %18, %19 : vector<8x128xf32>
    %21 = arith.addf %20, %8 : vector<8x128xf32>
    %c0_16 = arith.constant 0 : index
    %c0_17 = arith.constant 0 : index
    %22 = vector.load %arg3[%c0_16, %c0_17] : memref<128x128xf32, #tpu.memory_space<vmem>>, vector<128x128xf32>
    %cst_18 = arith.constant dense<0.000000e+00> : vector<8x128xf32>
    %23 = tpu.matmul %21, %22, %cst_18 {dimension_numbers = #tpu.dot_dimension_numbers<[1], [0], [0], [1], [0, 0, 1, 1], [], []>} : vector<8x128xf32>, vector<128x128xf32>, vector<8x128xf32> -> vector<8x128xf32>
    %24 = vector.broadcast %2 : vector<1x128xf32> to vector<8x128xf32>
    %25 = arith.addf %23, %24 : vector<8x128xf32>
    %cst_19 = arith.constant 0.000000e+00 : f32
    %26 = vector.broadcast %cst_19 : f32 to vector<8x128xf32>
    %27 = arith.maximumf %25, %26 : vector<8x128xf32>
    %c0_20 = arith.constant 0 : index
    %c0_21 = arith.constant 0 : index
    %28 = vector.load %arg4[%c0_20, %c0_21] : memref<128x128xf32, #tpu.memory_space<vmem>>, vector<128x128xf32>
    %cst_22 = arith.constant dense<0.000000e+00> : vector<8x128xf32>
    %29 = tpu.matmul %27, %28, %cst_22 {dimension_numbers = #tpu.dot_dimension_numbers<[1], [0], [0], [1], [0, 0, 1, 1], [], []>} : vector<8x128xf32>, vector<128x128xf32>, vector<8x128xf32> -> vector<8x128xf32>
    %30 = vector.broadcast %3 : vector<1x128xf32> to vector<8x128xf32>
    %31 = arith.addf %29, %30 : vector<8x128xf32>
    %cst_23 = arith.constant 0.000000e+00 : f32
    %32 = vector.broadcast %cst_23 : f32 to vector<8x128xf32>
    %33 = arith.maximumf %31, %32 : vector<8x128xf32>
    %34 = arith.addf %21, %33 : vector<8x128xf32>
    %c0_24 = arith.constant 0 : index
    %c0_25 = arith.constant 0 : index
    %35 = vector.load %arg5[%c0_24, %c0_25] : memref<128x128xf32, #tpu.memory_space<vmem>>, vector<128x128xf32>
    %cst_26 = arith.constant dense<0.000000e+00> : vector<8x128xf32>
    %36 = tpu.matmul %34, %35, %cst_26 {dimension_numbers = #tpu.dot_dimension_numbers<[1], [0], [0], [1], [0, 0, 1, 1], [], []>} : vector<8x128xf32>, vector<128x128xf32>, vector<8x128xf32> -> vector<8x128xf32>
    %37 = vector.broadcast %4 : vector<1x128xf32> to vector<8x128xf32>
    %38 = arith.addf %36, %37 : vector<8x128xf32>
    %c0_27 = arith.constant 0 : index
    %c0_28 = arith.constant 0 : index
    %39 = vector.load %arg7[%c0_27, %c0_28] : memref<8x128xf32, #tpu.memory_space<vmem>>, vector<8x128xf32>
    tpu.vector_store %arg7[%c0_27, %c0_28], %38 {strides = array<i32>} : memref<8x128xf32, #tpu.memory_space<vmem>>, vector<8x128xf32>,
    return
  }
  func.func @transform_0(%arg0: i32) -> (i32, i32) {
    %c0_i32 = arith.constant 0 : i32
    %c0_i32_0 = arith.constant 0 : i32
    return %arg0, %c0_i32 : i32, i32
  }
  func.func @transform_1(%arg0: i32) -> (i32, i32) {
    %c0_i32 = arith.constant 0 : i32
    %c0_i32_0 = arith.constant 0 : i32
    %c0_i32_1 = arith.constant 0 : i32
    return %c0_i32, %c0_i32_0 : i32, i32
  }
  func.func @transform_2(%arg0: i32) -> (i32, i32) {
    %c0_i32 = arith.constant 0 : i32
    %c0_i32_0 = arith.constant 0 : i32
    %c0_i32_1 = arith.constant 0 : i32
    return %c0_i32, %c0_i32_0 : i32, i32
  }
  func.func @transform_3(%arg0: i32) -> (i32, i32) {
    %c0_i32 = arith.constant 0 : i32
    %c0_i32_0 = arith.constant 0 : i32
    %c0_i32_1 = arith.constant 0 : i32
    return %c0_i32, %c0_i32_0 : i32, i32
  }
  func.func @transform_4(%arg0: i32) -> (i32, i32) {
    %c0_i32 = arith.constant 0 : i32
    %c0_i32_0 = arith.constant 0 : i32
    %c0_i32_1 = arith.constant 0 : i32
    return %c0_i32, %c0_i32_0 : i32, i32
  }
  func.func @transform_5(%arg0: i32) -> (i32, i32) {
    %c0_i32 = arith.constant 0 : i32
    %c0_i32_0 = arith.constant 0 : i32
    %c0_i32_1 = arith.constant 0 : i32
    return %c0_i32, %c0_i32_0 : i32, i32
  }
  func.func @transform_6(%arg0: i32) -> (i32, i32) {
    %c0_i32 = arith.constant 0 : i32
    %c0_i32_0 = arith.constant 0 : i32
    return %arg0, %c0_i32 : i32, i32
  }
}

</mosaic_0001>

<bundles_post_ra>
// kernel: tpu_custom_call.1
= control target key start
LH: loop header
LB: loop body
LE: loop exit
PB: predicated region body
PF: predicated region fallthrough
CT: control target
= control target key end

     0   :  { %11 = vsyncpa [#allocation3], 0  ;;  %s1405_s0 = inlined_call_operand.hbm [shape: f32[8,30], index: 0, kind: input, shape index: {}]   ;;  %s1406_s1 = inlined_call_operand.hbm [shape: f32[30,128], index: 1, kind: input, shape index: {}]   ;;  %s1407_s2 = inlined_call_operand.hbm [shape: f32[128,128], index: 2, kind: input, shape index: {}]   ;;  %s1408_s3 = inlined_call_operand.hbm [shape: f32[128,128], index: 3, kind: input, shape index: {}]   ;;  %s1409_s4 = inlined_call_operand.hbm [shape: f32[128,128], index: 4, kind: input, shape index: {}]   ;;  %s1410_s5 = inlined_call_operand.vmem [shape: f32[4,128], index: 5, kind: input, shape index: {}]   ;;  %s1411_s6 = inlined_call_operand.hbm [shape: f32[8,128], index: 6, kind: output, shape index: {}]  }
   0x1   :  { %12 = vsyncpa [#allocation6], 0 }
   0x2   :  { %13 = vsyncpa [#allocation9], 0 }
   0x3   :  { %14 = vsyncpa [#allocation4], 0  ;;  %s1176_s21 = smov [#allocation5]   ;;  %s1036_s25 = scalar_lea.hbm %s1406_s1, 512 }
   0x4   :  { %s30_s22 = sshll.u32 %s1176_s21, 4  ;;  %p1037_p0 = scmp.ne.s32.totalorder %s1406_s1, %s1036_s25  ;;  %s31_s22 = int_to_ptr.vmem [resolvable:$true] %s30_s22 }
   0x5   :  { %p1040_p1 = scmp.lt.u32.totalorder %s1036_s25, %s1406_s1 }
   0x7   :  { %p1042_p2 = pnand %p1040_p1, %p1037_p0 }
   0x9   :  { %1045 = shalt.err (!%p1042_p2)
}
   0xa   :  { %s1046_s30 = scalar_lea.vmem %s31_s22, 512  ;;  %p1051_p4 = scmp.lt.s32.totalorder %s31_s22, %s31_s22 }
   0xb   :  { %p1047_p3 = scmp.ne.s32.totalorder %s31_s22, %s1046_s30  ;;  %p1052_p5 = scmp.lt.s32.totalorder %s1046_s30, %s1046_s30 }
   0xd   :  { %p1053_p6 = por %p1052_p5, %p1051_p4 }
   0xf   :  { %p1054_p7 = pnand %p1053_p6, %p1047_p3 }
  0x11   :  { %1057 = shalt.err (!%p1054_p7)
}
  0x12   :  { %s1177_s7 = smov 128   ;;  %s1178_s8 = smov 8  }
  0x13   :  { %36 = dma.hbm_to_vmem [thread:$0]  %s1406_s1, 512, %s31_s22, [#allocation6], %s1177_s7, %s1177_s7, %s1178_s8  }
  0x14   :  { %s1179_s11 = smov [#allocation8]   ;;  %s1180_s13 = smov [#allocation2]  }
  0x15   :  { %s54_s12 = sshll.u32 %s1179_s11, 4  ;;  %s21_s14 = sshll.u32 %s1180_s13, 4  ;;  %s55_s12 = int_to_ptr.vmem [resolvable:$true] %s54_s12  ;;  %s22_s14 = int_to_ptr.vmem [resolvable:$true] %s21_s14 }
  0x16   :  { %s1058_s17 = scalar_lea.hbm %s1408_s3, 2048 }
  0x17   :  { %p1059_p8 = scmp.ne.s32.totalorder %s1408_s3, %s1058_s17  ;;  %p1062_p9 = scmp.lt.u32.totalorder %s1058_s17, %s1408_s3 }
  0x19   :  { %p1064_p10 = pnand %p1062_p9, %p1059_p8 }
  0x1b   :  { %1067 = shalt.err (!%p1064_p10)
}
  0x1c   :  { %s1068_s1 = scalar_lea.vmem %s55_s12, 2048  ;;  %p1073_p12 = scmp.lt.s32.totalorder %s55_s12, %s55_s12 }
  0x1d   :  { %p1069_p11 = scmp.ne.s32.totalorder %s55_s12, %s1068_s1  ;;  %p1074_p13 = scmp.lt.s32.totalorder %s1068_s1, %s1068_s1 }
  0x1f   :  { %p1075_p0 = por %p1074_p13, %p1073_p12 }
  0x21   :  { %p1076_p1 = pnand %p1075_p0, %p1069_p11 }
  0x23   :  { %1079 = shalt.err (!%p1076_p1)
}
  0x24   :  { %60 = dma.hbm_to_vmem [thread:$0]  %s1408_s3, 2048, %s55_s12, [#allocation9], %s1177_s7, %s1177_s7, %s1178_s8  }
  0x25   :  { %s1080_s26 = scalar_lea.hbm %s1405_s0, 128 }
  0x26   :  { %p1081_p2 = scmp.ne.s32.totalorder %s1405_s0, %s1080_s26  ;;  %p1084_p3 = scmp.lt.u32.totalorder %s1080_s26, %s1405_s0 }
  0x28   :  { %p1086_p4 = pnand %p1084_p3, %p1081_p2 }
  0x2a   :  { %1089 = shalt.err (!%p1086_p4)
}
  0x2b   :  { %s1090_s9 = scalar_lea.vmem %s22_s14, 128  ;;  %p1095_p6 = scmp.lt.s32.totalorder %s22_s14, %s22_s14 }
  0x2c   :  { %p1091_p5 = scmp.ne.s32.totalorder %s22_s14, %s1090_s9  ;;  %p1096_p7 = scmp.lt.s32.totalorder %s1090_s9, %s1090_s9 }
  0x2e   :  { %p1097_p8 = por %p1096_p7, %p1095_p6 }
  0x30   :  { %p1098_p9 = pnand %p1097_p8, %p1091_p5 }
  0x32   :  { %1101 = shalt.err (!%p1098_p9)
}
  0x33   :  { %24 = dma.hbm_to_vmem [thread:$0]  %s1405_s0, 128, %s22_s14, [#allocation3]  }
  0x34   :  { %s1181_s11 = smov [#allocation7]   ;;  %s1182_s13 = smov [#allocation10]  }
  0x35   :  { %s42_s12 = sshll.u32 %s1181_s11, 4  ;;  %s66_s15 = sshll.u32 %s1182_s13, 4  ;;  %s43_s12 = int_to_ptr.vmem [resolvable:$true] %s42_s12  ;;  %s67_s15 = int_to_ptr.vmem [resolvable:$true] %s66_s15 }
  0x36   :  { %s1102_s18 = scalar_lea.hbm %s1407_s2, 2048 }
  0x37   :  { %p1103_p10 = scmp.ne.s32.totalorder %s1407_s2, %s1102_s18  ;;  %p1106_p11 = scmp.lt.u32.totalorder %s1102_s18, %s1407_s2 }
  0x39   :  { %p1108_p12 = pnand %p1106_p11, %p1103_p10 }
  0x3b   :  { %1111 = shalt.err (!%p1108_p12)
}
  0x3c   :  { %s1112_s0 = scalar_lea.vmem %s43_s12, 2048  ;;  %p1117_p0 = scmp.lt.s32.totalorder %s43_s12, %s43_s12 }
  0x3d   :  { %p1113_p13 = scmp.ne.s32.totalorder %s43_s12, %s1112_s0  ;;  %p1118_p1 = scmp.lt.s32.totalorder %s1112_s0, %s1112_s0 }
  0x3f   :  { %p1119_p2 = por %p1118_p1, %p1117_p0 }
  0x41   :  { %p1120_p3 = pnand %p1119_p2, %p1113_p13 }
  0x43   :  { %1123 = shalt.err (!%p1120_p3)
}
  0x44   :  { %48 = dma.hbm_to_vmem [thread:$0]  %s1407_s2, 2048, %s43_s12, [#allocation6], %s1177_s7, %s1177_s7, %s1178_s8  }
  0x45   :  { %s1124_s25 = scalar_lea.hbm %s1409_s4, 2048 }
  0x46   :  { %p1125_p4 = scmp.ne.s32.totalorder %s1409_s4, %s1124_s25  ;;  %p1128_p5 = scmp.lt.u32.totalorder %s1124_s25, %s1409_s4 }
  0x48   :  { %p1130_p6 = pnand %p1128_p5, %p1125_p4 }
  0x4a   :  { %1133 = shalt.err (!%p1130_p6)
}
  0x4b   :  { %s1134_s30 = scalar_lea.vmem %s67_s15, 2048  ;;  %p1139_p8 = scmp.lt.s32.totalorder %s67_s15, %s67_s15 }
  0x4c   :  { %p1135_p7 = scmp.ne.s32.totalorder %s67_s15, %s1134_s30  ;;  %p1140_p9 = scmp.lt.s32.totalorder %s1134_s30, %s1134_s30 }
  0x4e   :  { %p1141_p10 = por %p1140_p9, %p1139_p8 }
  0x50   :  { %p1142_p11 = pnand %p1141_p10, %p1135_p7 }
  0x52   :  { %1145 = shalt.err (!%p1142_p11)
}
  0x53   :  { %72 = dma.hbm_to_vmem [thread:$0]  %s1409_s4, 2048, %s67_s15, [#allocation9], %s1177_s7, %s1177_s7, %s1178_s8  }
  0x54   :  { %1168 = dma.done.wait [#allocation3], 128  }
  0x55   :  { %1169 = vsyncadd [#allocation3], 4294967168 }
  0x56   :  { %1170 = dma.done.wait [#allocation6], 2560  }
  0x57   :  { %1171 = vsyncadd [#allocation6], 4294964736 }
  0x58   :  { %1172 = dma.done.wait [#allocation9], 4096  }
  0x59   :  { %1173 = vsyncadd [#allocation9], 4294963200  ;;  %v1183_v0 = vmov 0.0|0.0   ;;  %vm1184_vm0 = vmmov 0   ;;  %v1185_v1 = vmov 0.0   ;;  %v95_v2 = vld [vmem:[#allocation5] sm:$0xff] }
  0x5a   :  { %897 = vmatprep.subr.bf16.mxu0 %v1183_v0  ;;  %904 = vmatprep.subr.bf16.mxu1 %v1183_v0  ;;  %v96_v3 = vld [vmem:[#allocation5 + $0x8] sm:$0xff]  ;;  %v97_v4 = vld [vmem:[#allocation5 + $0x10] sm:$0xff]  ;;  %v98_v6 = vld [vmem:[#allocation5 + $0x18] sm:$0x3f]  ;;  %vm107_vm1 = vcmask 1045504   ;;  %vm1186_vm2 = vmmov 1  }
  0x5b   :  { %719 = vmatprep.mubr.msk.f32.mxu0 %vm1184_vm0, %v1185_v1  ;;  %754 = vmatprep.mubr.msk.f32.mxu1 %vm1184_vm0, %v1185_v1  ;;  %v898_v5 = vpack.c.bf16 %v96_v3, %v95_v2  ;;  %v181_v7 = vld [vmem:[#allocation7] sm:$0xff]  ;;  %v182_v8 = vld [vmem:[#allocation7 + $0x8] sm:$0xff]  ;;  %v183_v9 = vld [vmem:[#allocation7 + $0x10] sm:$0xff]  ;;  %v901_v11 = vpack.c.bf16 %v98_v6, %v97_v4  ;;  %vm103_vm4 = vcmask 244736   ;;  %s1187_s15 = smov [#allocation11]  }
  0x5c   :  { %v184_v10 = vld [vmem:[#allocation7 + $0x18] sm:$0xff]  ;;  %v1301_v12 = vpack.c.bf16 %v182_v8, %v181_v7  ;;  %vm902_vm3 = vmpackc.low %vm107_vm1, %vm1186_vm2  ;;  %v185_v14 = vld [vmem:[#allocation7 + $0x20] sm:$0xff]  ;;  %s604_s16 = sshll.u32 %s1187_s15, 4  ;;  %s605_s16 = int_to_ptr.vmem [resolvable:$true] %s604_s16 }
  0x5d   :  { %899 = vmatpush3.bf16.msra.mxu0 %v898_v5  ;;  %v1305_v13 = vpack.c.bf16 %v184_v10, %v183_v9  ;;  %v186_v15 = vld [vmem:[#allocation7 + $0x28] sm:$0xff]  ;;  %v90_v16 = vld [vmem:[#allocation2] sm:$0xff]  ;;  %v187_v18 = vld [vmem:[#allocation7 + $0x30] sm:$0xff]  ;;  %s1146_s17 = scalar_lea.vmem %s605_s16, 128  ;;  %p1151_p13 = scmp.lt.s32.totalorder %s605_s16, %s605_s16 }
  0x5e   :  { %900 = vmatprep.subr.bf16.mxu0 %v1183_v0  ;;  %906 = vmatpush3.bf16.msra.mxu1 %v1301_v12  ;;  %v1310_v17 = vpack.c.bf16 %v186_v15, %v185_v14  ;;  %v188_v19 = vld [vmem:[#allocation7 + $0x38] sm:$0xff]  ;;  %v189_v21 = vld [vmem:[#allocation7 + $0x40] sm:$0xff]  ;;  %v190_v22 = vld [vmem:[#allocation7 + $0x48] sm:$0xff]  ;;  %p1147_p12 = scmp.ne.s32.totalorder %s605_s16, %s1146_s17  ;;  %p1152_p0 = scmp.lt.s32.totalorder %s1146_s17, %s1146_s17 }
  0x5f   :  { %907 = vmatprep.subr.bf16.mxu1 %v1183_v0  ;;  %v1316_v20 = vpack.c.bf16 %v188_v19, %v187_v18  ;;  %v1320_v23 = vpack.c.bf16 %v190_v22, %v189_v21  ;;  %v191_v24 = vld [vmem:[#allocation7 + $0x50] sm:$0xff]  ;;  %v192_v25 = vld [vmem:[#allocation7 + $0x58] sm:$0xff]  ;;  %v193_v27 = vld [vmem:[#allocation7 + $0x60] sm:$0xff] }
  0x60   :  { %v1324_v26 = vpack.c.bf16 %v192_v25, %v191_v24  ;;  %v194_v28 = vld [vmem:[#allocation7 + $0x68] sm:$0xff]  ;;  %v195_v30 = vld [vmem:[#allocation7 + $0x70] sm:$0xff]  ;;  %v196_v31 = vld [vmem:[#allocation7 + $0x78] sm:$0xff]  ;;  %p1153_p1 = por %p1152_p0, %p1151_p13 }
  0x61   :  { %903 = vmatpush3.bf16.msk.msra.mxu0 %vm902_vm3, %v901_v11  ;;  %v923_v29 = vpack.c.bf16 %v194_v28, %v193_v27  ;;  %v926_v32 = vpack.c.bf16 %v196_v31, %v195_v30  ;;  %v272_v33 = vld [vmem:[#allocation8] sm:$0xff]  ;;  %v273_v34 = vld [vmem:[#allocation8 + $0x8] sm:$0xff]  ;;  %v274_v35 = vld [vmem:[#allocation8 + $0x10] sm:$0xff] }
  0x62   :  { %928 = vmatprep.subr.bf16.mxu0 %v1183_v0  ;;  %909 = vmatpush3.bf16.msra.mxu1 %v1305_v13  ;;  %v1331_v36 = vpack.c.bf16 %v273_v34, %v272_v33  ;;  %v275_v37 = vld [vmem:[#allocation8 + $0x18] sm:$0xff]  ;;  %v276_v39 = vld [vmem:[#allocation8 + $0x20] sm:$0xff]  ;;  %v277_v40 = vld [vmem:[#allocation8 + $0x28] sm:$0xff]  ;;  %p1154_p2 = pnand %p1153_p1, %p1147_p12 }
  0x63   :  { %910 = vmatprep.subr.bf16.mxu1 %v1183_v0  ;;  %v1334_v38 = vpack.c.bf16 %v275_v37, %v274_v35  ;;  %v935_v41 = vpack.c.bf16 %v277_v40, %v276_v39  ;;  %v278_v42 = vld [vmem:[#allocation8 + $0x30] sm:$0xff]  ;;  %v279_v43 = vld [vmem:[#allocation8 + $0x38] sm:$0xff]  ;;  %v280_v45 = vld [vmem:[#allocation8 + $0x40] sm:$0xff] }
  0x64   :  { %720 = vmatmul.mubr.msk.f32.vlgmr.msra.gmra.mrb[0].mxu0 %vm103_vm4, %v90_v16  ;;  %v938_v44 = vpack.c.bf16 %v279_v43, %v278_v42  ;;  %v281_v46 = vld [vmem:[#allocation8 + $0x48] sm:$0xff]  ;;  %v282_v48 = vld [vmem:[#allocation8 + $0x50] sm:$0xff]  ;;  %v283_v49 = vld [vmem:[#allocation8 + $0x58] sm:$0xff] }
  0x65   :  { %789 = vmatprep.mubr.msk.f32.mxu0 %vm1184_vm0, %v1185_v1  ;;  %930 = vmatpush3.bf16.msra.mxu0 %v1331_v36  ;;  %v941_v47 = vpack.c.bf16 %v281_v46, %v280_v45  ;;  %v944_v50 = vpack.c.bf16 %v283_v49, %v282_v48  ;;  %v284_v51 = vld [vmem:[#allocation8 + $0x60] sm:$0xff]  ;;  %v285_v52 = vld [vmem:[#allocation8 + $0x68] sm:$0xff]  ;;  %v615_v54 = vld [vmem:[%s1410_s5] ss:$0 sm:$0xff] }
  0x66   :  { %912 = vmatpush3.bf16.msra.mxu1 %v1310_v17  ;;  %931 = vmatprep.subr.bf16.mxu0 %v1183_v0  ;;  %v947_v53 = vpack.c.bf16 %v285_v52, %v284_v51  ;;  %v286_v58 = vld [vmem:[#allocation8 + $0x70] sm:$0xff]  ;;  %v287_v59 = vld [vmem:[#allocation8 + $0x78] sm:$0xff]  ;;  %v507_v10 = vld [vmem:[#allocation10] sm:$0xff] }
  0x67   :  { %913 = vmatprep.subr.bf16.mxu1 %v1183_v0  ;;  %v950_v60 = vpack.c.bf16 %v287_v59, %v286_v58  ;;  %v618_v61 = vld [vmem:[%s1410_s5 + $0x1] ss:$0 sm:$0xff]  ;;  %v619_v4 = vld [vmem:[%s1410_s5 + $0x2] ss:$0 sm:$0xff]  ;;  %v508_v11 = vld [vmem:[#allocation10 + $0x8] sm:$0xff] }
  0x68   :  { %v510_v14 = vld [vmem:[#allocation10 + $0x18] sm:$0xff]  ;;  %v511_v16 = vld [vmem:[#allocation10 + $0x20] sm:$0xff]  ;;  %v513_v19 = vld [vmem:[#allocation10 + $0x30] sm:$0xff] }
  0x69   :  { %933 = vmatpush3.bf16.msra.mxu0 %v1334_v38  ;;  %v516_v22 = vld [vmem:[#allocation10 + $0x48] sm:$0xff]  ;;  %v517_v24 = vld [vmem:[#allocation10 + $0x50] sm:$0xff]  ;;  %v518_v25 = vld [vmem:[#allocation10 + $0x58] sm:$0xff] }
  0x6a   :  { %915 = vmatpush3.bf16.msra.mxu1 %v1316_v20  ;;  %934 = vmatprep.subr.bf16.mxu0 %v1183_v0  ;;  %v519_v31 = vld [vmem:[#allocation10 + $0x60] sm:$0xff]  ;;  %v521_v34 = vld [vmem:[#allocation10 + $0x70] sm:$0xff]  ;;  %v522_v35 = vld [vmem:[#allocation10 + $0x78] sm:$0xff] }
  0x6b   :  { %916 = vmatprep.subr.bf16.mxu1 %v1183_v0  ;;  %v620_v42 = vld [vmem:[%s1410_s5 + $0x3] ss:$0 sm:$0xff] }
  0x6d   :  { %936 = vmatpush3.bf16.msra.mxu0 %v935_v41 }
  0x6e   :  { %918 = vmatpush3.bf16.msra.mxu1 %v1320_v23  ;;  %937 = vmatprep.subr.bf16.mxu0 %v1183_v0 }
  0x6f   :  { %919 = vmatprep.subr.bf16.mxu1 %v1183_v0 }
  0x71   :  { %939 = vmatpush3.bf16.msra.mxu0 %v938_v44 }
  0x72   :  { %921 = vmatpush3.bf16.msra.mxu1 %v1324_v26  ;;  %940 = vmatprep.subr.bf16.mxu0 %v1183_v0 }
  0x73   :  { %922 = vmatprep.subr.bf16.mxu1 %v1183_v0 }
  0x75   :  { %942 = vmatpush3.bf16.msra.mxu0 %v941_v47 }
  0x76   :  { %924 = vmatpush3.bf16.msra.mxu1 %v923_v29  ;;  %943 = vmatprep.subr.bf16.mxu0 %v1183_v0 }
  0x77   :  { %925 = vmatprep.subr.bf16.mxu1 %v1183_v0 }
  0x79   :  { %945 = vmatpush3.bf16.msra.mxu0 %v944_v50 }
  0x7a   :  { %927 = vmatpush3.bf16.msra.mxu1 %v926_v32  ;;  %946 = vmatprep.subr.bf16.mxu0 %v1183_v0 }
  0x7b   :  { %952 = vmatprep.subr.bf16.mxu1 %v1183_v0 }
  0x7d   :  { %948 = vmatpush3.bf16.msra.mxu0 %v947_v53 }
  0x7e   :  { %949 = vmatprep.subr.bf16.mxu0 %v1183_v0 }
  0x81   :  { %951 = vmatpush3.bf16.msra.mxu0 %v950_v60 }
  0x82   :  { %976 = vmatprep.subr.bf16.mxu0 %v1183_v0 }
 0x137   :  { %v177_v55 = vpop.f32.mrb[0].mxu0 }
 0x138   :  { %v178_v56 = vadd.f32 %v615_v54, %v177_v55  ;;  %v721_v57 = vpop.f32.mrb[1].mxu0 }
 0x13a   :  { %755 = vmatmul.mubr.f32.vlgmr.msra.gmra.mrb[0].mxu1 %v178_v56 }
 0x13b   :  { %954 = vmatpush3.bf16.msra.mxu1 %v1301_v12  ;;  %824 = vmatprep.mubr.msk.f32.mxu1 %vm1184_vm0, %v1185_v1  ;;  %v509_v12 = vld [vmem:[#allocation10 + $0x10] sm:$0xff] }
 0x13c   :  { %955 = vmatprep.subr.bf16.mxu1 %v1183_v0  ;;  %v1004_v15 = vpack.c.bf16 %v510_v14, %v509_v12 }
 0x13f   :  { %957 = vmatpush3.bf16.msra.mxu1 %v1305_v13  ;;  %v1001_v13 = vpack.c.bf16 %v508_v11, %v507_v10 }
 0x140   :  { %958 = vmatprep.subr.bf16.mxu1 %v1183_v0 }
 0x143   :  { %960 = vmatpush3.bf16.msra.mxu1 %v1310_v17  ;;  %v512_v17 = vld [vmem:[#allocation10 + $0x28] sm:$0xff] }
 0x144   :  { %961 = vmatprep.subr.bf16.mxu1 %v1183_v0  ;;  %v1007_v18 = vpack.c.bf16 %v512_v17, %v511_v16 }
 0x147   :  { %963 = vmatpush3.bf16.msra.mxu1 %v1316_v20  ;;  %v514_v20 = vld [vmem:[#allocation10 + $0x38] sm:$0xff] }
 0x148   :  { %964 = vmatprep.subr.bf16.mxu1 %v1183_v0  ;;  %v1010_v21 = vpack.c.bf16 %v514_v20, %v513_v19 }
 0x14b   :  { %966 = vmatpush3.bf16.msra.mxu1 %v1320_v23 }
 0x14c   :  { %967 = vmatprep.subr.bf16.mxu1 %v1183_v0 }
 0x14f   :  { %969 = vmatpush3.bf16.msra.mxu1 %v1324_v26  ;;  %v1016_v26 = vpack.c.bf16 %v518_v25, %v517_v24 }
 0x150   :  { %970 = vmatprep.subr.bf16.mxu1 %v1183_v0 }
 0x153   :  { %972 = vmatpush3.bf16.msra.mxu1 %v923_v29 }
 0x154   :  { %973 = vmatprep.subr.bf16.mxu1 %v1183_v0 }
 0x157   :  { %975 = vmatpush3.bf16.msra.mxu1 %v926_v32  ;;  %v520_v32 = vld [vmem:[#allocation10 + $0x68] sm:$0xff] }
 0x158   :  { %1000 = vmatprep.subr.bf16.mxu1 %v1183_v0  ;;  %v1019_v33 = vpack.c.bf16 %v520_v32, %v519_v31 }
 0x20d   :  { %v267_v62 = vpop.f32.mrb[0].mxu1 }
 0x20e   :  { %v268_v63 = vadd.f32 %v618_v61, %v267_v62  ;;  %v756_v2 = vpop.f32.mrb[1].mxu1 }
 0x210   :  { %v271_v3 = vmax.f32 %v268_v63, 0.0 }
 0x212   :  { %790 = vmatmul.mubr.f32.vlgmr.msra.gmra.mrb[2].mxu0 %v271_v3 }
 0x213   :  { %978 = vmatpush3.bf16.msra.mxu0 %v1331_v36  ;;  %859 = vmatprep.mubr.msk.f32.mxu0 %vm1184_vm0, %v1185_v1  ;;  %v1022_v36 = vpack.c.bf16 %v522_v35, %v521_v34 }
 0x214   :  { %979 = vmatprep.subr.bf16.mxu0 %v1183_v0 }
 0x217   :  { %981 = vmatpush3.bf16.msra.mxu0 %v1334_v38 }
 0x218   :  { %982 = vmatprep.subr.bf16.mxu0 %v1183_v0 }
 0x21b   :  { %984 = vmatpush3.bf16.msra.mxu0 %v935_v41 }
 0x21c   :  { %985 = vmatprep.subr.bf16.mxu0 %v1183_v0 }
 0x21f   :  { %987 = vmatpush3.bf16.msra.mxu0 %v938_v44 }
 0x220   :  { %988 = vmatprep.subr.bf16.mxu0 %v1183_v0 }
 0x223   :  { %990 = vmatpush3.bf16.msra.mxu0 %v941_v47 }
 0x224   :  { %991 = vmatprep.subr.bf16.mxu0 %v1183_v0 }
 0x227   :  { %993 = vmatpush3.bf16.msra.mxu0 %v944_v50 }
 0x228   :  { %994 = vmatprep.subr.bf16.mxu0 %v1183_v0 }
 0x22b   :  { %996 = vmatpush3.bf16.msra.mxu0 %v947_v53 }
 0x22c   :  { %997 = vmatprep.subr.bf16.mxu0 %v1183_v0 }
 0x22f   :  { %999 = vmatpush3.bf16.msra.mxu0 %v950_v60 }
 0x2e5   :  { %v358_v5 = vpop.f32.mrb[2].mxu0 }
 0x2e6   :  { %v359_v6 = vadd.f32 %v619_v4, %v358_v5  ;;  %v791_v7 = vpop.f32.mrb[3].mxu0 }
 0x2e8   :  { %v362_v8 = vmax.f32 %v359_v6, 0.0 }
 0x2ea   :  { %v363_v9 = vadd.f32 %v362_v8, %v178_v56 }
 0x2ec   :  { %825 = vmatmul.mubr.f32.vlgmr.msra.gmra.mrb[2].mxu1 %v363_v9 }
 0x2ed   :  { %894 = vmatprep.mubr.msk.f32.mxu1 %vm1184_vm0, %v1185_v1  ;;  %1002 = vmatpush3.bf16.msra.mxu1 %v1001_v13  ;;  %v515_v1 = vld [vmem:[#allocation10 + $0x40] sm:$0xff] }
 0x2ee   :  { %1003 = vmatprep.subr.bf16.mxu1 %v1183_v0  ;;  %v1013_v23 = vpack.c.bf16 %v516_v22, %v515_v1 }
 0x2f1   :  { %1005 = vmatpush3.bf16.msra.mxu1 %v1004_v15 }
 0x2f2   :  { %1006 = vmatprep.subr.bf16.mxu1 %v1183_v0 }
 0x2f5   :  { %1008 = vmatpush3.bf16.msra.mxu1 %v1007_v18 }
 0x2f6   :  { %1009 = vmatprep.subr.bf16.mxu1 %v1183_v0 }
 0x2f9   :  { %1011 = vmatpush3.bf16.msra.mxu1 %v1010_v21 }
 0x2fa   :  { %1012 = vmatprep.subr.bf16.mxu1 %v1183_v0 }
 0x2fd   :  { %1014 = vmatpush3.bf16.msra.mxu1 %v1013_v23 }
 0x2fe   :  { %1015 = vmatprep.subr.bf16.mxu1 %v1183_v0 }
 0x301   :  { %1017 = vmatpush3.bf16.msra.mxu1 %v1016_v26 }
 0x302   :  { %1018 = vmatprep.subr.bf16.mxu1 %v1183_v0 }
 0x305   :  { %1020 = vmatpush3.bf16.msra.mxu1 %v1019_v33 }
 0x306   :  { %1021 = vmatprep.subr.bf16.mxu1 %v1183_v0 }
 0x309   :  { %1023 = vmatpush3.bf16.msra.mxu1 %v1022_v36 }
 0x3bf   :  { %v430_v27 = vpop.f32.mrb[2].mxu1 }
 0x3c0   :  { %v431_v28 = vadd.f32 %v618_v61, %v430_v27  ;;  %v826_v29 = vpop.f32.mrb[3].mxu1 }
 0x3c2   :  { %v434_v30 = vmax.f32 %v431_v28, 0.0 }
 0x3c4   :  { %860 = vmatmul.mubr.f32.vlgmr.msra.gmra.mrb[4].mxu0 %v434_v30 }
 0x497   :  { %v501_v37 = vpop.f32.mrb[4].mxu0 }
 0x498   :  { %v502_v38 = vadd.f32 %v619_v4, %v501_v37  ;;  %v861_v39 = vpop.f32.mrb[5].mxu0 }
 0x49a   :  { %v505_v40 = vmax.f32 %v502_v38, 0.0 }
 0x49c   :  { %v506_v41 = vadd.f32 %v505_v40, %v363_v9 }
 0x49e   :  { %895 = vmatmul.mubr.f32.vlgmr.msra.gmra.mrb[4].mxu1 %v506_v41 }
 0x571   :  { %v593_v43 = vpop.f32.mrb[4].mxu1 }
 0x572   :  { %v594_v44 = vadd.f32 %v620_v42, %v593_v43  ;;  %v896_v45 = vpop.f32.mrb[5].mxu1 }
 0x574   :  { %597 = vst [vmem:[#allocation11] sm:$0xff] %v594_v44 }
 0x575   :  { %1157 = shalt.err (!%p1154_p2)
}
 0x576   :  { %s1158_s20 = scalar_lea.hbm %s1411_s6, 128 }
 0x577   :  { %p1159_p3 = scmp.ne.s32.totalorder %s1411_s6, %s1158_s20  ;;  %p1162_p4 = scmp.lt.u32.totalorder %s1158_s20, %s1411_s6 }
 0x579   :  { %p1164_p5 = pnand %p1162_p4, %p1159_p3 }
 0x57b   :  { %1167 = shalt.err (!%p1164_p5)
}
 0x57c   :  { %607 = dma.vmem_to_hbm [thread:$0]  %s605_s16, 128, %s1411_s6, [#allocation4]  }
 0x57d   :  { %1174 = dma.done.wait [#allocation4], 128  }
 0x57e   :  { %1175 = vsyncadd [#allocation4], 4294967168 }
 0x57f   :  { %611 = vsyncpa [#allocation3], 1 }
 0x580   :  { %612 = vsyncpa [#allocation6], 1 }
 0x581   :  { %613 = vsyncpa [#allocation9], 1 }
 0x582   :  { %614 = vsyncpa [#allocation4], 1 }

</bundles_post_ra>
